<compile_context>
chip_gen: v5e
topology: v5e:2x2
jax: 0.10.0
libtpu: 0.0.40
codegen_flags: <defaults>
</compile_context>

<pallas_src>
import math

import jax
import jax.numpy as jnp
from jax import lax
from jax.experimental import pallas as pl
from jax.experimental.pallas import tpu as pltpu

# ---- synthetic opt config ----
XYZ = 1
DIM_E = 1
OUT_SIZE = 4 * XYZ + DIM_E        # inputs = cat(x, r) feature size = 5
CON_SIZE = 32                     # encoder feature `d`
HID_SIZE = 32
HID_LAYER = 2
BATCH = 2
SEQ_LEN = 8

# packed external slab (per step, per row), lane offsets:
#   [x,r 0:5 | d 5:37 | 1.0 (bias) 37 | zero-pad 38:64]
LANE_ONE = OUT_SIZE + CON_SIZE            # 37
EXT_W = 64                                # external-slab lane width
# packed recurrent-state slab, lane offsets: [h0 0:32 | c0 32:64 | h1 64:96 | c1 96:128]
STATE_W = 4 * HID_SIZE                    # 128


def rnn_core_seq_kernel(ext_ref, init_ref, wext_ref, wrec_ref, wb1_ref,
                        out_ref, state_ref):
    """One RNNCore step per grid iteration; state carried in VMEM scratch.

    pre_both = ext_t @ W_ext + state @ W_rec        (bias folded into W_ext)
      layer 0: gates from pre_both[:, :128]
      layer 1: gates from pre_both[:, 128:] + h0_new @ Wb1
    Gate order along each 4H block: [g0 in | g1 forget | g2 out | g3 cand].
    """
    H = HID_SIZE
    t = pl.program_id(0)

    @pl.when(t == 0)
    def _():
        state_ref[...] = init_ref[...]

    s = state_ref[...]                       # (Bp, 128) = [h0|c0|h1|c1]
    ext = ext_ref[0]                         # (Bp, 64)  = [x,r|d|1|pad]

    pre_both = (
        jnp.dot(ext, wext_ref[...], preferred_element_type=jnp.float32)
        + jnp.dot(s, wrec_ref[...], preferred_element_type=jnp.float32)
    )                                        # (Bp, 256)

    # lane mask hoisted once, shared by both layers (JAX does not CSE iota).
    lane = lax.broadcasted_iota(jnp.int32, (s.shape[0], 4 * H), 1)
    sig_mask = lane < 3 * H                  # sigmoid for in/forget/out gates

    def gate_act(p):
        # single full-vreg tanh pass: sigmoid(x) = 0.5*tanh(0.5*x) + 0.5
        tt = jnp.tanh(jnp.where(sig_mask, 0.5 * p, p))
        return jnp.where(sig_mask, 0.5 * tt + 0.5, tt)

    # ---- layer 0 ----
    g = gate_act(pre_both[:, 0:4 * H])
    c0 = g[:, H:2 * H] * s[:, H:2 * H] + g[:, 0:H] * g[:, 3 * H:4 * H]
    h0 = g[:, 2 * H:3 * H] * jnp.tanh(c0)

    # ---- layer 1 (below_h = new h0) ----
    pre1 = pre_both[:, 4 * H:8 * H] + jnp.dot(
        h0, wb1_ref[...], preferred_element_type=jnp.float32)
    g = gate_act(pre1)
    c1 = g[:, H:2 * H] * s[:, 3 * H:4 * H] + g[:, 0:H] * g[:, 3 * H:4 * H]
    h1 = g[:, 2 * H:3 * H] * jnp.tanh(c1)

    # packed state update via static-offset sliced stores (no lane concat),
    # then one unmasked 128-lane store to the per-step output block.
    state_ref[:, 0:H] = h0
    state_ref[:, H:2 * H] = c0
    state_ref[:, 2 * H:3 * H] = h1
    state_ref[:, 3 * H:4 * H] = c1
    out_ref[0] = state_ref[...]


def rnn_core_unrolled(xs, rs, d, prev_h, prev_c, packed):
    """T applications of RNNCore.forward (HID_LAYER=2) in one pallas_call.

    xs: (T, B, 4*xyz), rs: (T, B, dim_e), d: (B, con_size),
    prev_h / prev_c: lists of (B, H) initial states per layer.
    Returns packed per-step states (T, Bp, 128) = [h0 | c0 | h1 | c1].
    """
    w_ext, w_rec, wb1 = packed
    T, B = xs.shape[0], xs.shape[1]
    Bp = max(8, ((B + 7) // 8) * 8)          # pad batch to f32 sublane multiple
    H = HID_SIZE

    # One-time packing of ALL per-step external slabs (not a per-step cost).
    ones = jnp.ones((T, B, 1), jnp.float32)
    d_t = jnp.broadcast_to(d[None, :, :], (T, B, CON_SIZE))
    ext = jnp.concatenate(
        [xs, rs, d_t, ones,
         jnp.zeros((T, B, EXT_W - LANE_ONE - 1), jnp.float32)], axis=-1)
    ext = jnp.pad(ext, ((0, 0), (0, Bp - B), (0, 0)))                # (T,Bp,64)

    init = jnp.concatenate([prev_h[0], prev_c[0], prev_h[1], prev_c[1]], axis=1)
    init = jnp.pad(init, ((0, Bp - B), (0, 0)))                      # (Bp,128)

    out = pl.pallas_call(
        rnn_core_seq_kernel,
        out_shape=jax.ShapeDtypeStruct((T, Bp, STATE_W), jnp.float32),
        grid_spec=pltpu.PrefetchScalarGridSpec(
            num_scalar_prefetch=0,
            grid=(T,),
            in_specs=[
                pl.BlockSpec((1, Bp, EXT_W), lambda t: (t, 0, 0)),   # streamed
                pl.BlockSpec((Bp, STATE_W), lambda t: (0, 0)),       # init state
                pl.BlockSpec((EXT_W, 2 * 4 * H), lambda t: (0, 0)),  # resident
                pl.BlockSpec((STATE_W, 2 * 4 * H), lambda t: (0, 0)),
                pl.BlockSpec((H, 4 * H), lambda t: (0, 0)),
            ],
            out_specs=pl.BlockSpec((1, Bp, STATE_W), lambda t: (t, 0, 0)),
            scratch_shapes=[pltpu.VMEM((Bp, STATE_W), jnp.float32)],
        ),
        compiler_params=pltpu.CompilerParams(
            dimension_semantics=("arbitrary",)),   # recurrence: must be serial
    )(ext, init, w_ext, w_rec, wb1)
    return out


rnn_core_forward = jax.jit(rnn_core_unrolled)


def init_params(key):
    """Deterministic params, matching LSTMUnit.reset_parameters semantics
    (uniform(-1/sqrt(hid), 1/sqrt(hid))).  Per layer we keep:
      Wi: (out_size, 4H)  <- i2hs[0..3].weight.T concatenated
      Wh: (H, 4H)         <- h2hs
      Wd: (con_size, 4H)  <- w2hs (encoder)
      Wb: (H, 4H)         <- bh2hs (layer_id > 0 only)
      b : (1, 4H)         <- sum of biases of all contributing Linears
    """
    stdv = 1.0 / math.sqrt(HID_SIZE)
    params = []
    for l in range(HID_LAYER):
        key, k_wi, k_wh, k_wd, k_wb, k_b = jax.random.split(key, 6)
        u = lambda k, shape: jax.random.uniform(k, shape, jnp.float32, -stdv, stdv)
        wi = u(k_wi, (OUT_SIZE, 4 * HID_SIZE))
        wh = u(k_wh, (HID_SIZE, 4 * HID_SIZE))
        wd = u(k_wd, (CON_SIZE, 4 * HID_SIZE))
        if l > 0:
            wb = u(k_wb, (HID_SIZE, 4 * HID_SIZE))
            n_bias = 4   # i2h + h2h + bh2h + w2h biases
        else:
            wb = None
            n_bias = 3   # i2h + h2h + w2h biases
        b = u(k_b, (n_bias, 4 * HID_SIZE)).sum(axis=0, keepdims=True)
        params.append((wi, wh, wd, wb, b))
    return params


def pack_params(params):
    """Pack weights to match the kernel's lane layouts.

    W_ext (64, 256): rows [x,r 0:5 | d 5:37 | bias 37] -> [layer0 4H | layer1 4H]
    W_rec (128,256): rows [h0 0:32 | c0 | h1 64:96 | c1] (c rows stay zero)
    Wb1   (32, 128): below_h (new h0) -> layer-1 gates.
    """
    wi0, wh0, wd0, _wb0, b0 = params[0]
    wi1, wh1, wd1, wb1, b1 = params[1]
    H, H4 = HID_SIZE, 4 * HID_SIZE

    w_ext = jnp.zeros((EXT_W, 2 * H4), jnp.float32)
    w_ext = w_ext.at[0:OUT_SIZE, 0:H4].set(wi0)
    w_ext = w_ext.at[0:OUT_SIZE, H4:2 * H4].set(wi1)
    w_ext = w_ext.at[OUT_SIZE:OUT_SIZE + CON_SIZE, 0:H4].set(wd0)
    w_ext = w_ext.at[OUT_SIZE:OUT_SIZE + CON_SIZE, H4:2 * H4].set(wd1)
    w_ext = w_ext.at[LANE_ONE, 0:H4].set(b0[0])          # bias via 1.0 lane
    w_ext = w_ext.at[LANE_ONE, H4:2 * H4].set(b1[0])

    w_rec = jnp.zeros((STATE_W, 2 * H4), jnp.float32)
    w_rec = w_rec.at[0:H, 0:H4].set(wh0)                 # prev_h[0] -> layer 0
    w_rec = w_rec.at[2 * H:3 * H, H4:2 * H4].set(wh1)    # prev_h[1] -> layer 1

    return w_ext, w_rec, wb1


def rnn_core_reference_step(x, r, d, prev_h, prev_c, params):
    """Pure-JAX reference mirroring one RNNCore.forward (the PyTorch math).
    Uses default matmul precision (same MXU path as the kernel) so the check
    validates kernel structure rather than MXU rounding."""
    inputs = jnp.concatenate([x, r], axis=1)
    H = HID_SIZE
    next_h, next_c = [], []
    below_h = None
    for l in range(HID_LAYER):
        wi, wh, wd, wb, b = params[l]
        pre = jnp.dot(inputs, wi) + jnp.dot(prev_h[l], wh) + jnp.dot(d, wd) + b
        if l > 0:
            pre = pre + jnp.dot(below_h, wb)
        g0 = jax.nn.sigmoid(pre[:, 0 * H:1 * H])
        g1 = jax.nn.sigmoid(pre[:, 1 * H:2 * H])
        g2 = jax.nn.sigmoid(pre[:, 2 * H:3 * H])
        g3 = jnp.tanh(pre[:, 3 * H:4 * H])
        nc = g1 * prev_c[l] + g0 * g3
        nh = g2 * jnp.tanh(nc)
        next_h.append(nh)
        next_c.append(nc)
        below_h = nh
    return next_h, next_c


if __name__ == "__main__":
    key = jax.random.PRNGKey(0)
    k_param, k_x, k_r, k_d, k_h, k_c = jax.random.split(key, 6)

    params = init_params(k_param)
    packed = pack_params(params)

    T, H = SEQ_LEN, HID_SIZE
    xs = jax.random.normal(k_x, (T, BATCH, 4 * XYZ), jnp.float32)    # (8,2,4)
    rs = jax.random.normal(k_r, (T, BATCH, DIM_E), jnp.float32)      # (8,2,1)
    d = jax.random.normal(k_d, (BATCH, CON_SIZE), jnp.float32)       # (2,32)
    prev_h = [jax.random.normal(jax.random.fold_in(k_h, l),
                                (BATCH, HID_SIZE), jnp.float32)
              for l in range(HID_LAYER)]
    prev_c = [jax.random.normal(jax.random.fold_in(k_c, l),
                                (BATCH, HID_SIZE), jnp.float32)
              for l in range(HID_LAYER)]

    out = rnn_core_forward(xs, rs, d, prev_h, prev_c, packed)        # (8,8,128)
    out = jax.block_until_ready(out)

    # step-by-step reference unroll of the module forward
    h, c = list(prev_h), list(prev_c)
    for t in range(T):
        h, c = rnn_core_reference_step(xs[t], rs[t], d, h, c, params)
        step = out[t, :BATCH]
        got = [step[:, 0:H], step[:, H:2 * H],
               step[:, 2 * H:3 * H], step[:, 3 * H:4 * H]]
        want = [h[0], c[0], h[1], c[1]]
        for g_arr, w_arr in zip(got, want):
            assert jnp.allclose(g_arr, w_arr, atol=2e-2, rtol=2e-2), (
                f"mismatch at step {t}")

    print("KERNEL_OK")
</pallas_src>

<mosaic_0001>
module attributes {stable_mosaic.version = 11 : i64} {
  func.func @rnn_core_seq_kernel(%arg0: i32, %arg1: memref<1x8x64xf32, #tpu.memory_space<vmem>>, %arg2: memref<8x128xf32, #tpu.memory_space<vmem>>, %arg3: memref<64x256xf32, #tpu.memory_space<vmem>>, %arg4: memref<128x256xf32, #tpu.memory_space<vmem>>, %arg5: memref<32x128xf32, #tpu.memory_space<vmem>>, %arg6: memref<1x8x128xf32, #tpu.memory_space<vmem>>, %arg7: memref<8x128xf32, #tpu.memory_space<vmem>>) attributes {dimension_semantics = [#tpu.dimension_semantics<arbitrary>], iteration_bounds = array<i64: 8>, scalar_prefetch = 0 : i64, scratch_operands = 1 : i64, tpu.core_type = #tpu.core_type<tc>, window_params = [{transform_indices = @transform_0, window_bounds = array<i64: 1, 8, 64>}, {pipeline_mode = #tpu.pipeline_mode<synchronous>, transform_indices = @transform_1, window_bounds = array<i64: 8, 128>}, {pipeline_mode = #tpu.pipeline_mode<synchronous>, transform_indices = @transform_2, window_bounds = array<i64: 64, 256>}, {pipeline_mode = #tpu.pipeline_mode<synchronous>, transform_indices = @transform_3, window_bounds = array<i64: 128, 256>}, {pipeline_mode = #tpu.pipeline_mode<synchronous>, transform_indices = @transform_4, window_bounds = array<i64: 32, 128>}, {transform_indices = @transform_5, window_bounds = array<i64: 1, 8, 128>}]} {
    %c0_i32 = arith.constant 0 : i32
    %0 = arith.cmpi eq, %arg0, %c0_i32 : i32
    %1 = arith.extui %0 : i1 to i32
    %c0_i32_0 = arith.constant 0 : i32
    %2 = arith.cmpi ne, %1, %c0_i32_0 : i32
    scf.if %2 {
      %c0_29 = arith.constant 0 : index
      %c0_30 = arith.constant 0 : index
      %65 = vector.load %arg2[%c0_29, %c0_30] : memref<8x128xf32, #tpu.memory_space<vmem>>, vector<8x128xf32>
      %c0_31 = arith.constant 0 : index
      %c0_32 = arith.constant 0 : index
      %66 = vector.load %arg7[%c0_31, %c0_32] : memref<8x128xf32, #tpu.memory_space<vmem>>, vector<8x128xf32>
      tpu.vector_store %arg7[%c0_31, %c0_32], %65 {strides = array<i32>} : memref<8x128xf32, #tpu.memory_space<vmem>>, vector<8x128xf32>,
    } else {
    }
    %c0 = arith.constant 0 : index
    %c0_1 = arith.constant 0 : index
    %3 = vector.load %arg7[%c0, %c0_1] : memref<8x128xf32, #tpu.memory_space<vmem>>, vector<8x128xf32>
    %c0_2 = arith.constant 0 : index
    %c0_3 = arith.constant 0 : index
    %c0_4 = arith.constant 0 : index
    %4 = vector.load %arg1[%c0_2, %c0_3, %c0_4] : memref<1x8x64xf32, #tpu.memory_space<vmem>>, vector<1x8x64xf32>
    %5 = vector.shape_cast %4 : vector<1x8x64xf32> to vector<8x64xf32>
    %c0_5 = arith.constant 0 : index
    %c0_6 = arith.constant 0 : index
    %6 = vector.load %arg3[%c0_5, %c0_6] : memref<64x256xf32, #tpu.memory_space<vmem>>, vector<64x256xf32>
    %cst = arith.constant dense<0.000000e+00> : vector<8x256xf32>
    %7 = tpu.matmul %5, %6, %cst {dimension_numbers = #tpu.dot_dimension_numbers<[1], [0], [0], [1], [0, 0, 1, 1], [], []>} : vector<8x64xf32>, vector<64x256xf32>, vector<8x256xf32> -> vector<8x256xf32>
    %c0_7 = arith.constant 0 : index
    %c0_8 = arith.constant 0 : index
    %8 = vector.load %arg4[%c0_7, %c0_8] : memref<128x256xf32, #tpu.memory_space<vmem>>, vector<128x256xf32>
    %cst_9 = arith.constant dense<0.000000e+00> : vector<8x256xf32>
    %9 = tpu.matmul %3, %8, %cst_9 {dimension_numbers = #tpu.dot_dimension_numbers<[1], [0], [0], [1], [0, 0, 1, 1], [], []>} : vector<8x128xf32>, vector<128x256xf32>, vector<8x256xf32> -> vector<8x256xf32>
    %10 = arith.addf %7, %9 : vector<8x256xf32>
    %11 = tpu.iota {dimensions = array<i32: 1>} : vector<8x128xi32>
    %c96_i32 = arith.constant 96 : i32
    %12 = vector.broadcast %c96_i32 : i32 to vector<8x128xi32>
    %13 = arith.cmpi slt, %11, %12 : vector<8x128xi32>
    %14 = vector.extract_strided_slice %10 {offsets = [0, 0], sizes = [8, 128], strides = [1, 1]} : vector<8x256xf32> to vector<8x128xf32>
    %cst_10 = arith.constant 5.000000e-01 : f32
    %15 = vector.broadcast %cst_10 : f32 to vector<8x128xf32>
    %16 = arith.mulf %15, %14 : vector<8x128xf32>
    %17 = arith.select %13, %16, %14 : vector<8x128xi1>, vector<8x128xf32>
    %18 = math.tanh %17 : vector<8x128xf32>
    %cst_11 = arith.constant 5.000000e-01 : f32
    %19 = vector.broadcast %cst_11 : f32 to vector<8x128xf32>
    %20 = arith.mulf %19, %18 : vector<8x128xf32>
    %cst_12 = arith.constant 5.000000e-01 : f32
    %21 = vector.broadcast %cst_12 : f32 to vector<8x128xf32>
    %22 = arith.addf %20, %21 : vector<8x128xf32>
    %23 = arith.select %13, %22, %18 : vector<8x128xi1>, vector<8x128xf32>
    %24 = vector.extract_strided_slice %23 {offsets = [0, 32], sizes = [8, 32], strides = [1, 1]} : vector<8x128xf32> to vector<8x32xf32>
    %25 = vector.extract_strided_slice %3 {offsets = [0, 32], sizes = [8, 32], strides = [1, 1]} : vector<8x128xf32> to vector<8x32xf32>
    %26 = arith.mulf %24, %25 : vector<8x32xf32>
    %27 = vector.extract_strided_slice %23 {offsets = [0, 0], sizes = [8, 32], strides = [1, 1]} : vector<8x128xf32> to vector<8x32xf32>
    %28 = vector.extract_strided_slice %23 {offsets = [0, 96], sizes = [8, 32], strides = [1, 1]} : vector<8x128xf32> to vector<8x32xf32>
    %29 = arith.mulf %27, %28 : vector<8x32xf32>
    %30 = arith.addf %26, %29 : vector<8x32xf32>
    %31 = vector.extract_strided_slice %23 {offsets = [0, 64], sizes = [8, 32], strides = [1, 1]} : vector<8x128xf32> to vector<8x32xf32>
    %32 = math.tanh %30 : vector<8x32xf32>
    %33 = arith.mulf %31, %32 : vector<8x32xf32>
    %34 = vector.extract_strided_slice %10 {offsets = [0, 128], sizes = [8, 128], strides = [1, 1]} : vector<8x256xf32> to vector<8x128xf32>
    %c0_13 = arith.constant 0 : index
    %c0_14 = arith.constant 0 : index
    %35 = vector.load %arg5[%c0_13, %c0_14] : memref<32x128xf32, #tpu.memory_space<vmem>>, vector<32x128xf32>
    %cst_15 = arith.constant dense<0.000000e+00> : vector<8x128xf32>
    %36 = tpu.matmul %33, %35, %cst_15 {dimension_numbers = #tpu.dot_dimension_numbers<[1], [0], [0], [1], [0, 0, 1, 1], [], []>} : vector<8x32xf32>, vector<32x128xf32>, vector<8x128xf32> -> vector<8x128xf32>
    %37 = arith.addf %34, %36 : vector<8x128xf32>
    %cst_16 = arith.constant 5.000000e-01 : f32
    %38 = vector.broadcast %cst_16 : f32 to vector<8x128xf32>
    %39 = arith.mulf %38, %37 : vector<8x128xf32>
    %40 = arith.select %13, %39, %37 : vector<8x128xi1>, vector<8x128xf32>
    %41 = math.tanh %40 : vector<8x128xf32>
    %cst_17 = arith.constant 5.000000e-01 : f32
    %42 = vector.broadcast %cst_17 : f32 to vector<8x128xf32>
    %43 = arith.mulf %42, %41 : vector<8x128xf32>
    %cst_18 = arith.constant 5.000000e-01 : f32
    %44 = vector.broadcast %cst_18 : f32 to vector<8x128xf32>
    %45 = arith.addf %43, %44 : vector<8x128xf32>
    %46 = arith.select %13, %45, %41 : vector<8x128xi1>, vector<8x128xf32>
    %47 = vector.extract_strided_slice %46 {offsets = [0, 32], sizes = [8, 32], strides = [1, 1]} : vector<8x128xf32> to vector<8x32xf32>
    %48 = vector.extract_strided_slice %3 {offsets = [0, 96], sizes = [8, 32], strides = [1, 1]} : vector<8x128xf32> to vector<8x32xf32>
    %49 = arith.mulf %47, %48 : vector<8x32xf32>
    %50 = vector.extract_strided_slice %46 {offsets = [0, 0], sizes = [8, 32], strides = [1, 1]} : vector<8x128xf32> to vector<8x32xf32>
    %51 = vector.extract_strided_slice %46 {offsets = [0, 96], sizes = [8, 32], strides = [1, 1]} : vector<8x128xf32> to vector<8x32xf32>
    %52 = arith.mulf %50, %51 : vector<8x32xf32>
    %53 = arith.addf %49, %52 : vector<8x32xf32>
    %54 = vector.extract_strided_slice %46 {offsets = [0, 64], sizes = [8, 32], strides = [1, 1]} : vector<8x128xf32> to vector<8x32xf32>
    %55 = math.tanh %53 : vector<8x32xf32>
    %56 = arith.mulf %54, %55 : vector<8x32xf32>
    %c0_19 = arith.constant 0 : index
    %c0_20 = arith.constant 0 : index
    %57 = vector.load %arg7[%c0_19, %c0_20] : memref<8x128xf32, #tpu.memory_space<vmem>>, vector<8x32xf32>
    tpu.vector_store %arg7[%c0_19, %c0_20], %33 {strides = array<i32>} : memref<8x128xf32, #tpu.memory_space<vmem>>, vector<8x32xf32>,
    %c0_21 = arith.constant 0 : index
    %c32 = arith.constant 32 : index
    %58 = vector.load %arg7[%c0_21, %c32] : memref<8x128xf32, #tpu.memory_space<vmem>>, vector<8x32xf32>
    tpu.vector_store %arg7[%c0_21, %c32], %30 {strides = array<i32>} : memref<8x128xf32, #tpu.memory_space<vmem>>, vector<8x32xf32>,
    %c0_22 = arith.constant 0 : index
    %c64 = arith.constant 64 : index
    %59 = vector.load %arg7[%c0_22, %c64] : memref<8x128xf32, #tpu.memory_space<vmem>>, vector<8x32xf32>
    tpu.vector_store %arg7[%c0_22, %c64], %56 {strides = array<i32>} : memref<8x128xf32, #tpu.memory_space<vmem>>, vector<8x32xf32>,
    %c0_23 = arith.constant 0 : index
    %c96 = arith.constant 96 : index
    %60 = vector.load %arg7[%c0_23, %c96] : memref<8x128xf32, #tpu.memory_space<vmem>>, vector<8x32xf32>
    tpu.vector_store %arg7[%c0_23, %c96], %53 {strides = array<i32>} : memref<8x128xf32, #tpu.memory_space<vmem>>, vector<8x32xf32>,
    %c0_24 = arith.constant 0 : index
    %c0_25 = arith.constant 0 : index
    %61 = vector.load %arg7[%c0_24, %c0_25] : memref<8x128xf32, #tpu.memory_space<vmem>>, vector<8x128xf32>
    %c0_26 = arith.constant 0 : index
    %c0_27 = arith.constant 0 : index
    %c0_28 = arith.constant 0 : index
    %62 = vector.load %arg6[%c0_26, %c0_27, %c0_28] : memref<1x8x128xf32, #tpu.memory_space<vmem>>, vector<1x8x128xf32>
    %63 = vector.shape_cast %62 : vector<1x8x128xf32> to vector<8x128xf32>
    %64 = vector.shape_cast %61 : vector<8x128xf32> to vector<1x8x128xf32>
    tpu.vector_store %arg6[%c0_26, %c0_27, %c0_28], %64 {strides = array<i32>} : memref<1x8x128xf32, #tpu.memory_space<vmem>>, vector<1x8x128xf32>,
    return
  }
  func.func @transform_0(%arg0: i32) -> (i32, i32, i32) {
    %c0_i32 = arith.constant 0 : i32
    %c0_i32_0 = arith.constant 0 : i32
    %c0_i32_1 = arith.constant 0 : i32
    return %arg0, %c0_i32, %c0_i32_0 : i32, i32, i32
  }
  func.func @transform_1(%arg0: i32) -> (i32, i32) {
    %c0_i32 = arith.constant 0 : i32
    %c0_i32_0 = arith.constant 0 : i32
    %c0_i32_1 = arith.constant 0 : i32
    return %c0_i32, %c0_i32_0 : i32, i32
  }
  func.func @transform_2(%arg0: i32) -> (i32, i32) {
    %c0_i32 = arith.constant 0 : i32
    %c0_i32_0 = arith.constant 0 : i32
    %c0_i32_1 = arith.constant 0 : i32
    return %c0_i32, %c0_i32_0 : i32, i32
  }
  func.func @transform_3(%arg0: i32) -> (i32, i32) {
    %c0_i32 = arith.constant 0 : i32
    %c0_i32_0 = arith.constant 0 : i32
    %c0_i32_1 = arith.constant 0 : i32
    return %c0_i32, %c0_i32_0 : i32, i32
  }
  func.func @transform_4(%arg0: i32) -> (i32, i32) {
    %c0_i32 = arith.constant 0 : i32
    %c0_i32_0 = arith.constant 0 : i32
    %c0_i32_1 = arith.constant 0 : i32
    return %c0_i32, %c0_i32_0 : i32, i32
  }
  func.func @transform_5(%arg0: i32) -> (i32, i32, i32) {
    %c0_i32 = arith.constant 0 : i32
    %c0_i32_0 = arith.constant 0 : i32
    %c0_i32_1 = arith.constant 0 : i32
    return %arg0, %c0_i32, %c0_i32_0 : i32, i32, i32
  }
}

</mosaic_0001>

<bundles_post_ra>
// kernel: rnn_core_unrolled.1
= control target key start
LH: loop header
LB: loop body
LE: loop exit
PB: predicated region body
PF: predicated region fallthrough
CT: control target
= control target key end

     0   :  { %10 = vsyncpa [#allocation4], 0  ;;  %s990_s0 = inlined_call_operand.vmem [shape: f32[8,8,64], index: 0, kind: input, shape index: {}]   ;;  %s991_s1 = inlined_call_operand.vmem [shape: f32[8,128], index: 1, kind: input, shape index: {}]   ;;  %s992_s2 = inlined_call_operand.vmem [shape: f32[64,256], index: 2, kind: input, shape index: {}]   ;;  %s993_s3 = inlined_call_operand.hbm [shape: f32[128,256], index: 3, kind: input, shape index: {}]   ;;  %s994_s4 = inlined_call_operand.vmem [shape: f32[32,128], index: 4, kind: input, shape index: {}]   ;;  %s995_s5 = inlined_call_operand.hbm [shape: f32[8,8,128], index: 5, kind: output, shape index: {}]  }
   0x1   :  { %11 = vsyncpa [#allocation5], 0 }
   0x2   :  { %13 = vsyncpa [#allocation5 + $0x1], 0  ;;  %s773_s18 = smov 0   ;;  %s775_s19 = smov 0  }
   0x3   :  { %s777_s20 = smov 0   ;;  %s779_s21 = smov 0  }
   0x4 LB: > { %s794_s22 = sadd.s32 4294967295, %s736_s21   ;;  %s562_s23 = sadd.s32 4294967294, %s736_s21   ;;  %s736_s21 = sphi %s779_s21, %s1001_s21   ;;  %s732_s20 = sphi %s777_s20, %s1000_s20   ;;  %s728_s19 = sphi %s775_s19, %s999_s19   ;;  %s724_s18 = sphi %s773_s18, %s998_s18  }
   0x5   : > { %s798_s24 = sadd.s32 1, %s736_s21   ;;  %s136_s25 = sadd.s32 1, %s732_s20 }
   0x6   : > { %s133_s26 = ssub.s32 %s736_s21, %s798_s24  ;;  %p146_p0 = scmp.ne.s32.totalorder %s732_s20, %s728_s19 }
   0x7   : > { %p134_p1 = scmp.eq.s32.totalorder %s133_s26, 0  ;;  %p147_p2 = scmp.eq.s32.totalorder %s794_s22, 7 }
   0x8   : > { %p152_p3 = scmp.ne.s32.totalorder %s728_s19, %s724_s18  ;;  %p153_p4 = scmp.eq.s32.totalorder %s562_s23, 7 }
   0x9   : > { %s809_s27 = scalar_select %p134_p1, %s732_s20, %s136_s25  }
   0xa   : > { %p811_p5 = por %p147_p2, %p146_p0  ;;  %p815_p6 = por %p153_p4, %p152_p3 }
   0xb   : > { %p563_p7 = scmp.ge.s32.totalorder %s736_s21, 1  ;;  %p160_p8 = scmp.lt.s32.totalorder %s736_s21, 9 }
   0xc   : > { %p564_p9 = scmp.ne.s32.totalorder %s794_s22, 0  ;;  %p592_p10 = scmp.eq.s32.totalorder %s794_s22, 0 }
   0xd   : > { %p161_p11 = pnand %p563_p7, %p160_p8  ;;  %s177_s7 = sshll.u32 %s993_s3, 4  ;;  %s178_s7 = int_to_ptr.hbm [resolvable:$true] %s177_s7 }
   0xe   : > { %s738_s8 = smov [#allocation3]   ;;  %s739_s10 = smov 256  }
   0xf   : > { %p584_p12 = pneg %p161_p11  ;;  %s179_s9 = sshll.u32 %s738_s8, 4  ;;  %s180_s9 = int_to_ptr.vmem [resolvable:$true] %s179_s9 }
  0x10   : > { %s740_s11 = smov 16   ;;  %205 = sbr.rel (%p161_p11) target bundleno = 1173 (0x495), region = 40 }
  0x11   : > { %p585_p13 = pnand %p592_p10, %p584_p12 }
  0x13   : > { %587 = dma.hbm_to_vmem [thread:$0]  (!%p585_p13), %s178_s7, 4096, %s180_s9, [#allocation4], %s739_s10, %s739_s10, %s740_s11  }
  0x15   : > { %715 = dma.done.wait (%p592_p10), [#allocation4], 4096  }
  0x16   : > { %717 = vsyncadd (%p592_p10), [#allocation4], 4294963200  ;;  %s230_s12 = sand.u32 1, %s728_s19   ;;  %p233_p0 = scmp.lt.s32.totalorder %s794_s22, 7 }
  0x17   : > { %s836_s13 = sshll.u32 %s230_s12, 3  ;;  %240 = sbr.rel (%p564_p9) target bundleno = 30 (0x1e), region = 48 }
  0x18   : > { %s234_s14 = scalar_select %p233_p0, %s794_s22, 7 }
  0x19   : > { %s232_s25 = scalar_lea.vmem [#allocation6], %s836_s13 }
  0x1a   : > { %s569_s15 = sshll.u32 %s234_s14, 3 }
  0x1b   : > { %s842_s23 = scalar_lea.vmem %s990_s0, %s569_s15 }
  0x1c   : > { %v241_v0 = vld [vmem:[%s991_s1] sm:$0xff] }
  0x1d   : > { %242 = vst [vmem:[#allocation2] sm:$0xff] %v241_v0 }
  0x1e PF: > { %v291_v1 = vld [vmem:[#allocation3 + $0xf0] sm:$0xff]  ;;  %v289_v2 = vld [vmem:[#allocation3 + $0xe0] sm:$0xff]  ;;  %v259_v4 = vld [vmem:[%s992_s2 + $0x70] sm:$0xff]  ;;  %vm333_vm0 = vcmask 523264   ;;  %v377_v27 = vlaneseq  ;;  %s742_s10 = smov 64   ;;  %vm410_vm2 = vcmask 261120  }
  0x1f   : > { %293 = vmatpush.msra.mxu0 %v291_v1  ;;  %v287_v3 = vld [vmem:[#allocation3 + $0xd0] sm:$0xff]  ;;  %v257_v5 = vld [vmem:[%s992_s2 + $0x60] sm:$0xff]  ;;  %345 = vmatpush.msra.mxu2 %v259_v4  ;;  %v285_v6 = vld [vmem:[#allocation3 + $0xc0] sm:$0xff]  ;;  %vm463_vm3 = vcmask 523520   ;;  %vm465_vm4 = vcmask 785920   ;;  %vm471_vm5 = vcmask 1048320  }
  0x20   : > { %v255_v7 = vld [vmem:[%s992_s2 + $0x50] sm:$0xff]  ;;  %v283_v8 = vld [vmem:[#allocation3 + $0xb0] sm:$0xff]  ;;  %v253_v9 = vld [vmem:[%s992_s2 + $0x40] sm:$0xff]  ;;  %v882_v29 = vand.u32 127, %v377_v27  ;;  %s575_s11 = sshll.u32 %s794_s22, 3  ;;  %s488_s17 = sshll.u32 %s232_s25, 4  ;;  %s489_s17 = int_to_ptr.vmem [resolvable:$true] %s488_s17 }
  0x21   : > { %294 = vmatpush.msra.mxu0 %v289_v2  ;;  %346 = vmatpush.msra.mxu2 %v257_v5  ;;  %v281_v10 = vld [vmem:[#allocation3 + $0xa0] sm:$0xff]  ;;  %v251_v11 = vld [vmem:[%s992_s2 + $0x30] sm:$0xff]  ;;  %v279_v12 = vld [vmem:[#allocation3 + $0x90] sm:$0xff]  ;;  %s486_s16 = scalar_lea.hbm %s995_s5, %s575_s11  ;;  %s690_s8 = scalar_lea.hbm %s995_s5, 64 }
  0x22   : > { %v249_v13 = vld [vmem:[%s992_s2 + $0x20] sm:$0xff]  ;;  %v277_v14 = vld [vmem:[#allocation3 + $0x80] sm:$0xff]  ;;  %v247_v15 = vld [vmem:[%s992_s2 + $0x10] sm:$0xff]  ;;  %vm379_vm1 = vcmp.lt.s32.totalorder %v882_v29, 96  ;;  %s490_s26 = sshll.u32 %s486_s16, 4  ;;  %s491_s26 = int_to_ptr.hbm [resolvable:$true] %s490_s26 }
  0x23   : > { %295 = vmatpush.msra.mxu0 %v287_v3  ;;  %347 = vmatpush.msra.mxu2 %v255_v7  ;;  %v275_v16 = vld [vmem:[#allocation3 + $0x70] sm:$0xff]  ;;  %v245_v17 = vld [vmem:[%s992_s2] sm:$0xff]  ;;  %v273_v19 = vld [vmem:[#allocation3 + $0x60] sm:$0xff]  ;;  %s684_s30 = sshra.s32 %s491_s26, 4  ;;  %s685_s30 = int_to_ptr.hbm [resolvable:$true] %s684_s30 }
  0x24   : > { %v875_v18 = vld [vmem:[%s842_s23] sm:$0xff]  ;;  %v271_v20 = vld [vmem:[#allocation3 + $0x50] sm:$0xff]  ;;  %v269_v21 = vld [vmem:[#allocation3 + $0x40] sm:$0xff]  ;;  %s741_s23 = smov 32   ;;  %s686_s22 = scalar_lea.hbm %s685_s30, 8 }
  0x25   : > { %296 = vmatpush.msra.mxu0 %v285_v6  ;;  %348 = vmatpush.msra.mxu2 %v253_v9  ;;  %v267_v22 = vld [vmem:[#allocation3 + $0x30] sm:$0xff]  ;;  %v265_v23 = vld [vmem:[#allocation3 + $0x20] sm:$0xff]  ;;  %v879_v26 = vld [vmem:[#allocation2] sm:$0xff]  ;;  %p687_p1 = scmp.ne.s32.totalorder %s685_s30, %s686_s22  ;;  %p691_p4 = scmp.lt.s32.totalorder %s685_s30, %s995_s5 }
  0x26   : > { %v263_v24 = vld [vmem:[#allocation3 + $0x10] sm:$0xff]  ;;  %v261_v25 = vld [vmem:[#allocation3] sm:$0xff]  ;;  %v292_v44 = vld [vmem:[#allocation3 + $0xf8] sm:$0xff]  ;;  %p692_p7 = scmp.lt.s32.totalorder %s690_s8, %s686_s22 }
  0x27   : > { %297 = vmatpush.msra.mxu0 %v283_v8  ;;  %349 = vmatpush.msra.mxu2 %v251_v11  ;;  %v290_v45 = vld [vmem:[#allocation3 + $0xe8] sm:$0xff]  ;;  %v288_v46 = vld [vmem:[#allocation3 + $0xd8] sm:$0xff]  ;;  %v260_v47 = vld [vmem:[%s992_s2 + $0x78] sm:$0xff]  ;;  %p688_p2 = pnand %p687_p1, %p811_p5 }
  0x28   : > { %313 = vmatpush.msra.mxu1 %v292_v44  ;;  %v258_v48 = vld [vmem:[%s992_s2 + $0x68] sm:$0xff]  ;;  %365 = vmatpush.msra.mxu3 %v260_v47  ;;  %v286_v49 = vld [vmem:[#allocation3 + $0xc8] sm:$0xff]  ;;  %v256_v50 = vld [vmem:[%s992_s2 + $0x58] sm:$0xff]  ;;  %p693_p8 = por %p692_p7, %p691_p4 }
  0x29   : > { %298 = vmatpush.msra.mxu0 %v281_v10  ;;  %350 = vmatpush.msra.mxu2 %v249_v13  ;;  %v406_v51 = vld [vmem:[%s994_s4 + $0x18] sm:$0xff]  ;;  %v284_v52 = vld [vmem:[#allocation3 + $0xb8] sm:$0xff]  ;;  %v254_v53 = vld [vmem:[%s992_s2 + $0x48] sm:$0xff]  ;;  %p689_p3 = pneg %p688_p2 }
  0x2a   : > { %314 = vmatpush.msra.mxu1 %v290_v45  ;;  %366 = vmatpush.msra.mxu3 %v258_v48  ;;  %v405_v54 = vld [vmem:[%s994_s4 + $0x10] sm:$0xff]  ;;  %v404_v55 = vld [vmem:[%s994_s4 + $0x8] sm:$0xff]  ;;  %v252_v57 = vld [vmem:[%s992_s2 + $0x38] sm:$0xff] }
  0x2b   : > { %299 = vmatpush.msra.mxu0 %v279_v12  ;;  %351 = vmatpush.msra.mxu2 %v247_v15  ;;  %v282_v56 = vld [vmem:[#allocation3 + $0xa8] sm:$0xff]  ;;  %v403_v58 = vld [vmem:[%s994_s4] sm:$0xff]  ;;  %v250_v60 = vld [vmem:[%s992_s2 + $0x28] sm:$0xff]  ;;  %p694_p9 = pnand %p693_p8, %p689_p3 }
  0x2c   : > { %315 = vmatpush.msra.mxu1 %v288_v46  ;;  %367 = vmatpush.msra.mxu3 %v256_v50  ;;  %v280_v59 = vld [vmem:[#allocation3 + $0x98] sm:$0xff]  ;;  %v278_v61 = vld [vmem:[#allocation3 + $0x88] sm:$0xff]  ;;  %v248_v62 = vld [vmem:[%s992_s2 + $0x18] sm:$0xff] }
  0x2d   : > { %300 = vmatpush.msra.mxu0 %v277_v14  ;;  %352 = vmatpush.msra.mxu2 %v245_v17  ;;  %v276_v63 = vld [vmem:[#allocation3 + $0x78] sm:$0xff]  ;;  %v246_v0 = vld [vmem:[%s992_s2 + $0x8] sm:$0xff]  ;;  %v274_v1 = vld [vmem:[#allocation3 + $0x68] sm:$0xff] }
  0x2e   : > { %571 = vmatmul.msk.f32.vlgmr.msra.gmra.mxu2 %vm333_vm0, %v875_v18  ;;  %316 = vmatpush.msra.mxu1 %v286_v49  ;;  %v272_v2 = vld [vmem:[#allocation3 + $0x58] sm:$0xff]  ;;  %v270_v3 = vld [vmem:[#allocation3 + $0x48] sm:$0xff] }
  0x2f   : > { %301 = vmatpush.msra.mxu0 %v275_v16  ;;  %425 = vmatpush.msrb.mxu2 %v406_v51  ;;  %v268_v4 = vld [vmem:[#allocation3 + $0x38] sm:$0xff]  ;;  %v266_v5 = vld [vmem:[#allocation3 + $0x28] sm:$0xff] }
  0x30   : > { %317 = vmatpush.msra.mxu1 %v284_v52  ;;  %368 = vmatpush.msra.mxu3 %v254_v53  ;;  %v264_v8 = vld [vmem:[#allocation3 + $0x18] sm:$0xff]  ;;  %v262_v9 = vld [vmem:[#allocation3 + $0x8] sm:$0xff] }
  0x31   : > { %302 = vmatpush.msra.mxu0 %v273_v19  ;;  %426 = vmatpush.msrb.mxu2 %v405_v54 }
  0x32   : > { %318 = vmatpush.msra.mxu1 %v282_v56  ;;  %369 = vmatpush.msra.mxu3 %v252_v57 }
  0x33   : > { %303 = vmatpush.msra.mxu0 %v271_v20  ;;  %427 = vmatpush.msrb.mxu2 %v404_v55 }
  0x34   : > { %319 = vmatpush.msra.mxu1 %v280_v59  ;;  %370 = vmatpush.msra.mxu3 %v250_v60 }
  0x35   : > { %304 = vmatpush.msra.mxu0 %v269_v21  ;;  %428 = vmatpush.msrb.mxu2 %v403_v58 }
  0x36   : > { %320 = vmatpush.msra.mxu1 %v278_v61  ;;  %371 = vmatpush.msra.mxu3 %v248_v62 }
  0x37   : > { %305 = vmatpush.msra.mxu0 %v267_v22 }
  0x38   : > { %321 = vmatpush.msra.mxu1 %v276_v63  ;;  %372 = vmatpush.msra.mxu3 %v246_v0 }
  0x39   : > { %306 = vmatpush.msra.mxu0 %v265_v23  ;;  %572 = vmatmul.msk.f32.vlgmr.msra.gmra.mxu3 %vm333_vm0, %v875_v18 }
  0x3a   : > { %322 = vmatpush.msra.mxu1 %v274_v1 }
  0x3b   : > { %307 = vmatpush.msra.mxu0 %v263_v24 }
  0x3c   : > { %323 = vmatpush.msra.mxu1 %v272_v2 }
  0x3d   : > { %308 = vmatpush.msra.mxu0 %v261_v25 }
  0x3e   : > { %309 = vmatmul.f32.vlgmr.msra.gmra.mxu0 %v879_v26  ;;  %324 = vmatpush.msra.mxu1 %v270_v3 }
  0x40   : > { %325 = vmatpush.msra.mxu1 %v268_v4 }
  0x42   : > { %326 = vmatpush.msra.mxu1 %v266_v5 }
  0x44   : > { %327 = vmatpush.msra.mxu1 %v264_v8 }
  0x46   : > { %328 = vmatpush.msra.mxu1 %v262_v9 }
  0x47   : > { %329 = vmatmul.f32.vlgmr.msra.gmra.mxu1 %v879_v26 }
  0xb1   : > { %v354_v28 = vpop.f32.mrf.mxu2 }
  0xbb   : > { %v310_v30 = vpop.f32.mrf.mxu0 }
  0xbc   : > { %v355_v31 = vadd.f32 %v354_v28, %v310_v30  ;;  %v374_v12 = vpop.f32.mrf.mxu3 }
  0xbe   : > { %v380_v32 = vmul.f32 0.5, %v355_v31 }
  0xc0   : > { %v381_v33 = vsel %vm379_vm1, %v380_v32, %v355_v31 }
  0xc1   : > { %632 = vtanh.f32 %v381_v33 }
  0xc4   : > { %v330_v11 = vpop.f32.mrf.mxu1 }
  0xc5   : > { %v375_v13 = vadd.f32 %v374_v12, %v330_v11 }
  0xc7   : > { %v633_v34 = vpop.eup %632 }
  0xc8   : > { %v383_v35 = vmul.f32 0.5, %v633_v34 }
  0xca   : > { %v384_v36 = vadd.f32 0.5, %v383_v35 }
  0xcc   : > { %v889_v37 = vsel %vm379_vm1, %v384_v36, %v633_v34 }
  0xcd   : > { %388 = vrot.lane.b32.xlu0 %v889_v37, %s741_s23  ;;  %v386_v40 = vmul.f32 %v889_v37, %v879_v26 }
 0x13f   : > { %v389_v38 = vpop.permute.xlu0 %388 }
 0x140   : > { %v391_v39 = vmul.f32 %v389_v38, %v889_v37 }
 0x142   : > { %393 = vrot.lane.b32.xlu0 %v391_v39, %s741_s23 }
 0x1b4   : > { %v394_v41 = vpop.permute.xlu0 %393 }
 0x1b5   : > { %v897_v42 = vadd.f32 %v394_v41, %v386_v40 }
 0x1b7   : > { %634 = vtanh.f32 %v897_v42 }
 0x1bd   : > { %v635_v43 = vpop.eup %634 }
 0x1be   : > { %399 = vrot.lane.b32.xlu1 %v635_v43, %s741_s23 }
 0x230   : > { %v400_v6 = vpop.permute.xlu1 %399 }
 0x231   : > { %v402_v7 = vmul.f32 %v400_v6, %v889_v37 }
 0x233   : > { %408 = vrot.lane.b32.xlu1 %v402_v7, %s742_s10 }
 0x2a5   : > { %v409_v10 = vpop.permute.xlu1 %408 }
 0x2a6   : > { %462 = vst.msk [vmem:[#allocation2] sm:$0xff] %vm410_vm2, %v409_v10  ;;  %573 = vmatmul.msk.f32.vlgmr.msrb.gmra.mxu2 %vm410_vm2, %v409_v10 }
 0x2a7   : > { %464 = vst.msk [vmem:[#allocation2] sm:$0xff] %vm463_vm3, %v897_v42 }
 0x329   : > { %v430_v14 = vpop.f32.mrf.mxu2 }
 0x32a   : > { %v433_v15 = vadd.f32 %v430_v14, %v375_v13 }
 0x32c   : > { %v434_v16 = vmul.f32 0.5, %v433_v15 }
 0x32e   : > { %v435_v17 = vsel %vm379_vm1, %v434_v16, %v433_v15 }
 0x32f   : > { %636 = vtanh.f32 %v435_v17 }
 0x335   : > { %v637_v18 = vpop.eup %636 }
 0x336   : > { %v437_v19 = vmul.f32 0.5, %v637_v18 }
 0x338   : > { %v438_v20 = vadd.f32 0.5, %v437_v19 }
 0x33a   : > { %v439_v21 = vsel %vm379_vm1, %v438_v20, %v637_v18 }
 0x33b   : > { %446 = vrot.lane.b32.xlu2 %v439_v21, %s741_s23 }
 0x343   : > { %441 = vrot.lane.b32.xlu2 %v879_v26, %s742_s10 }
 0x395   : > { %v447_v22 = vpop.permute.xlu2 %446 }
 0x396   : > { %v449_v23 = vmul.f32 %v447_v22, %v439_v21 }
 0x398   : > { %451 = vrot.lane.b32.xlu0 %v449_v23, %s741_s23 }
 0x39d   : > { %v442_v24 = vpop.permute.xlu2 %441 }
 0x39e   : > { %v444_v25 = vmul.f32 %v442_v24, %v439_v21 }
 0x40a   : > { %v452_v27 = vpop.permute.xlu0 %451 }
 0x40b   : > { %v454_v28 = vadd.f32 %v452_v27, %v444_v25 }
 0x40d   : > { %638 = vtanh.f32 %v454_v28  ;;  %468 = vrot.lane.b32.xlu2 %v454_v28, %s742_s10 }
 0x413   : > { %v639_v29 = vpop.eup %638 }
 0x414   : > { %457 = vrot.lane.b32.xlu1 %v639_v29, %s741_s23  ;;  %s476_s23 = scalar_lea.sflag [#allocation5], %s230_s12 }
 0x467   : > { %v469_v31 = vpop.permute.xlu2 %468 }
 0x486   : > { %v458_v26 = vpop.permute.xlu1 %457 }
 0x487   : > { %v460_v30 = vmul.f32 %v458_v26, %v439_v21 }
 0x489   : > { %466 = vst.msk [vmem:[#allocation2] sm:$0xff] %vm465_vm4, %v460_v30 }
 0x48a   : > { %472 = vst.msk [vmem:[#allocation2] sm:$0xff] %vm471_vm5, %v469_v31 }
 0x491   : > { %v473_v32 = vld [vmem:[#allocation2] sm:$0xff] }
 0x492   : > { %474 = vst [vmem:[%s232_s25] sm:$0xff] %v473_v32 }
 0x493   : > { %697 = shalt.err (!%p694_p9)
}
 0x494   : > { %582 = dma.vmem_to_hbm [thread:$0]  (%p811_p5), %s489_s17, 128, %s491_s26, %s476_s23  }
 0x495 PF: > { %p594_p10 = scmp.ge.s32.totalorder %s736_s21, 2  ;;  %s502_s12 = sand.u32 1, %s724_s18  }
 0x496   : > { %s503_s13 = scalar_lea.sflag [#allocation5], %s502_s12 }
 0x497   : > { %p589_p11 = pnand %p594_p10, %p815_p6 }
 0x499   : > { %p590_p12 = pneg %p589_p11 }
 0x49b   : > { %719 = dma.done.wait (%p590_p12), %s503_s13, 128  }
 0x49c   : > { %721 = vsyncadd (%p590_p12), %s503_s13, 4294967168  ;;  %p16_p13 = scmp.ge.s32.totalorder %s798_s24, 10   ;;  %s998_s18 = smov %s728_s19 }
 0x49d   : > { %s999_s19 = smov %s732_s20  ;;  %s1000_s20 = smov %s809_s27 }
 0x49e   : > { %s1001_s21 = smov %s798_s24  ;;  %18 = sbr.rel (!%p16_p13) target bundleno = 4 (0x4), region = 84 }
 0x4a3   :  { %509 = vsyncpa [#allocation4], 1 }
 0x4a4   :  { %511 = vsyncpa [#allocation4 + $0x1], 1 }
 0x4a5   :  { %512 = vsyncpa [#allocation5], 1 }
 0x4a6   :  { %514 = vsyncpa [#allocation5 + $0x1], 1 }

</bundles_post_ra>
